<compile_context>
chip_gen: v6e
topology: v6e:2x2x1
jax: 0.10.0
libtpu: 0.0.40
codegen_flags: <defaults>
</compile_context>

<pallas_src>
import jax
import jax.numpy as jnp
from jax.experimental import pallas as pl
from jax.experimental.pallas import tpu as pltpu


def _round_up(x, m):
    return ((x + m - 1) // m) * m


# ----------------------------- Pallas kernels -----------------------------

def charcnn_kernel(x_ref, w_ref, b_ref, o_ref):
    """CharCNN.get_last_hiddens hot path fused to ONE matmul.

    x_ref: (TN, C, 3*Ec) bf16 pre-im2col'ed char embeddings (NWC, k=3, pad=1)
    w_ref: (3*Ec, Hc)    bf16 conv weight (tap-major rows)
    b_ref: (1, Hc)       f32  conv bias
    o_ref: (TN, Hc)      f32
    """
    tn, c, kec = x_ref.shape
    hc = w_ref.shape[-1]
    x = x_ref[...].reshape(tn * c, kec)                      # leading-dim merge: layout free
    acc = jnp.dot(x, w_ref[...], preferred_element_type=jnp.float32)
    acc = acc.reshape(tn, c, hc)
    # bias after the max-pool: max(acc + b) == max(acc) + b (b constant over char positions)
    o_ref[...] = jnp.max(acc, axis=1) + b_ref[...]


def head_kernel(ent_ref, chf_ref, rs_ref, xcat_ref,
                watt_ref, wmh_ref, wih_ref, wsh_ref, whid_ref, wout_ref, pb_ref,
                out_ref):
    """Mention attention + mention_hidden + BiLSTM(first/last step) + sent_hidden + hidden
    + out, fused and tiled over batch.

    ent_ref : (TB, L, E)   f32   mention word embeddings
    chf_ref : (TB, L, Hc)  f32   char-CNN features (already seq-recovered)
    rs_ref  : (TB, 2)      f32   [entity_length, full_sentence_mask]
    xcat_ref: (TB, 2E)     f32   [sent word emb at t=0 | at t=T-1]
    watt_ref: (1, E+Hc)    f32   attention weight row (W has no bias)
    wmh_ref : (E+Hc, H)    bf16  mention_hidden weight
    wih_ref : (2E, 6H)     bf16  block-diag LSTM input weights, cols [i_f|i_b|g_f|g_b|o_f|o_b]
    wsh_ref : (2H, SH)     bf16  sent_hidden weight
    whid_ref: (H+SH, H)    bf16  hidden weight
    wout_ref: (H, NCPAD)   bf16  out weight, classes zero-padded to 128 lanes
    pb_ref  : (1, NCPAD+6H+H+SH+H) f32 packed biases [b_out | b_ih | b_mh | b_sh | b_hid]
    out_ref : (TB, NCPAD)  f32
    """
    ent = ent_ref[...]
    chf = chf_ref[...]
    tb, seq_len, e = ent.shape
    h = wmh_ref.shape[1]
    sh = wsh_ref.shape[1]
    g6 = wih_ref.shape[1]
    ncpad = wout_ref.shape[1]
    bf16 = jnp.bfloat16

    # packed biases (static lane slices of one operand)
    pb = pb_ref[...]
    o1 = ncpad
    o2 = o1 + g6
    o3 = o2 + h
    o4 = o3 + sh
    b_out = pb[:, :o1]
    b_ih = pb[:, o1:o2]
    b_mh = pb[:, o2:o3]
    b_sh = pb[:, o3:o4]
    b_hid = pb[:, o4:o4 + h]

    lens = rs_ref[:, 0:1]           # (TB, 1) entity lengths
    full_mask = rs_ref[:, 1:2]      # (TB, 1) 1.0 iff sentence length == padded T

    # ---- masked mention attention.  softmax(dim=1) followed by length-mask + renorm
    #      equals a single normalization of exp(logits)*mask (the softmax constant cancels).
    wa = watt_ref[...]                                        # (1, E+Hc)
    logits = (jnp.sum(ent * wa[:, :e], axis=-1)
              + jnp.sum(chf * wa[:, e:], axis=-1))            # (TB, L)
    mmax = jnp.max(logits, axis=1, keepdims=True)
    ex = jnp.exp(logits - mmax)
    iota = jax.lax.broadcasted_iota(jnp.float32, (tb, seq_len), 1)
    ex = ex * (iota < lens).astype(jnp.float32)
    denom = jnp.sum(ex, axis=1, keepdims=True)
    alphas = ex * pl.reciprocal(jnp.maximum(denom, 1e-30), approx=True)
    aw = alphas[:, :, None]
    atten_e = jnp.sum(aw * ent, axis=1)                       # (TB, E)
    atten_c = jnp.sum(aw * chf, axis=1)                       # (TB, Hc)

    # mention_hidden: K-split dots on sublane-aligned row slices of one weight buffer
    # (one DMA; avoids an unaligned lane-concat of [atten_e | atten_c]).
    wmh = wmh_ref[...]
    mention = (jnp.dot(atten_e.astype(bf16), wmh[:e], preferred_element_type=jnp.float32)
               + jnp.dot(atten_c.astype(bf16), wmh[e:], preferred_element_type=jnp.float32)
               + b_mh)                                        # (TB, H)

    # ---- packed BiLSTM with zero initial state: only lstm_out[0,:, :H] (fwd t=0) and
    #      lstm_out[-1,:, H:] (bwd first step; nonzero only for full-length sentences) are
    #      read downstream, so ONE fused block-diagonal gate matmul suffices.
    # TODO(synk): LSTM weight_hh never affects this forward (h0=c0=0 and only the first cell
    # step of each direction is consumed), so it is omitted; revisit if other timesteps or a
    # nonzero initial state are ever read.
    gates = (jnp.dot(xcat_ref[...].astype(bf16), wih_ref[...],
                     preferred_element_type=jnp.float32) + b_ih)          # (TB, 6H)
    h2 = g6 // 3                                              # = 2H
    i_all = jax.nn.sigmoid(gates[:, 0:h2])
    g_all = jnp.tanh(gates[:, h2:2 * h2])
    o_all = jax.nn.sigmoid(gates[:, 2 * h2:3 * h2])
    h_all = o_all * jnp.tanh(i_all * g_all)                   # (TB, 2H) = [h_fwd | h_bwd]
    col = jax.lax.broadcasted_iota(jnp.int32, (tb, h2), 1)
    h_all = h_all * jnp.where(col < h, 1.0, full_mask)        # bwd half only if full length

    sent_h = (jnp.dot(h_all.astype(bf16), wsh_ref[...],
                      preferred_element_type=jnp.float32) + b_sh)         # (TB, SH)

    # hidden: K-split dots on sublane-aligned slices of one packed weight buffer.
    whid = whid_ref[...]
    hid = (jnp.dot(mention.astype(bf16), whid[:h], preferred_element_type=jnp.float32)
           + jnp.dot(sent_h.astype(bf16), whid[h:], preferred_element_type=jnp.float32)
           + b_hid)                                           # (TB, H)

    # lane-dense (128-wide) output; wrapper slices the real classes.
    out_ref[...] = jnp.dot(hid.astype(bf16), wout_ref[...],
                           preferred_element_type=jnp.float32) + b_out


# ----------------------------- wrappers -----------------------------

def char_cnn_pallas(x_im2col, conv_w, conv_b, *, max_tile=256):
    n, c, kec = x_im2col.shape
    hc = conv_w.shape[-1]
    tile_n = min(max_tile, _round_up(n, 8))
    n_pad = _round_up(n, tile_n)
    if n_pad != n:
        x_im2col = jnp.pad(x_im2col, ((0, n_pad - n), (0, 0), (0, 0)))
    out = pl.pallas_call(
        charcnn_kernel,
        out_shape=jax.ShapeDtypeStruct((n_pad, hc), jnp.float32),
        grid=(n_pad // tile_n,),
        in_specs=[
            pl.BlockSpec((tile_n, c, kec), lambda i: (i, 0, 0)),
            pl.BlockSpec((kec, hc), lambda i: (0, 0)),
            pl.BlockSpec((1, hc), lambda i: (0, 0)),
        ],
        out_specs=pl.BlockSpec((tile_n, hc), lambda i: (i, 0)),
        compiler_params=pltpu.CompilerParams(dimension_semantics=("parallel",)),
    )(x_im2col, conv_w, conv_b)
    return out[:n]


def head_pallas(params, ent_emb, char_feats, row_scalars, x0xT, *, tile_b=8):
    b = ent_emb.shape[0]
    b_pad = _round_up(b, tile_b)
    if b_pad != b:
        pad = b_pad - b
        ent_emb = jnp.pad(ent_emb, ((0, pad), (0, 0), (0, 0)))
        char_feats = jnp.pad(char_feats, ((0, pad), (0, 0), (0, 0)))
        x0xT = jnp.pad(x0xT, ((0, pad), (0, 0)))
        row_scalars = jnp.pad(row_scalars, ((0, pad), (0, 0)))
        row_scalars = row_scalars.at[b:, 0].set(1.0)   # keep attention renorm finite on pad rows
    _, l, e = ent_emb.shape
    hc = char_feats.shape[-1]
    w_att, w_mh, w_ih, w_sh, w_hid, w_out, pb = (
        params["w_att"], params["w_mh"], params["w_ih_blk"], params["w_sh"],
        params["w_hid"], params["w_out"], params["b_packed"])
    ncpad = w_out.shape[-1]
    out = pl.pallas_call(
        head_kernel,
        out_shape=jax.ShapeDtypeStruct((b_pad, ncpad), jnp.float32),
        grid=(b_pad // tile_b,),
        in_specs=[
            pl.BlockSpec((tile_b, l, e), lambda i: (i, 0, 0)),
            pl.BlockSpec((tile_b, l, hc), lambda i: (i, 0, 0)),
            pl.BlockSpec((tile_b, 2), lambda i: (i, 0)),
            pl.BlockSpec((tile_b, x0xT.shape[-1]), lambda i: (i, 0)),
            pl.BlockSpec(w_att.shape, lambda i: (0, 0)),
            pl.BlockSpec(w_mh.shape, lambda i: (0, 0)),
            pl.BlockSpec(w_ih.shape, lambda i: (0, 0)),
            pl.BlockSpec(w_sh.shape, lambda i: (0, 0)),
            pl.BlockSpec(w_hid.shape, lambda i: (0, 0)),
            pl.BlockSpec(w_out.shape, lambda i: (0, 0)),
            pl.BlockSpec(pb.shape, lambda i: (0, 0)),
        ],
        out_specs=pl.BlockSpec((tile_b, ncpad), lambda i: (i, 0)),
        compiler_params=pltpu.CompilerParams(dimension_semantics=("parallel",)),
    )(ent_emb, char_feats, row_scalars, x0xT, w_att, w_mh, w_ih, w_sh, w_hid, w_out, pb)
    return out[:b]


# ----------------------------- parameters & forward -----------------------------

def init_params(key, vocab_size, char_alphabet_size, E, H, SH, CH_E, CH_H, num_classes):
    D_in = E + CH_H
    ks = jax.random.split(key, 20)

    def rnd(k, shape, scale=0.1):
        return jax.random.normal(k, shape, dtype=jnp.float32) * scale

    # PyTorch-shaped parameters
    word_emb = rnd(ks[0], (vocab_size, E))
    char_emb = rnd(ks[1], (char_alphabet_size, CH_E))
    conv_w_pt = rnd(ks[2], (CH_H, CH_E, 3))              # nn.Conv1d weight (out, in, k)
    conv_b = rnd(ks[3], (CH_H,))
    w_att_pt = rnd(ks[4], (1, D_in))                     # nn.Linear(D_in, 1, bias=False)
    w_mh_pt = rnd(ks[5], (H, D_in)); b_mh = rnd(ks[6], (H,))
    w_ihf_pt = rnd(ks[7], (4 * H, E)); b_ihf = rnd(ks[8], (4 * H,)); b_hhf = rnd(ks[9], (4 * H,))
    w_ihb_pt = rnd(ks[10], (4 * H, E)); b_ihb = rnd(ks[11], (4 * H,)); b_hhb = rnd(ks[12], (4 * H,))
    w_sh_pt = rnd(ks[13], (SH, 2 * H)); b_sh = rnd(ks[14], (SH,))
    w_hid_pt = rnd(ks[15], (H, H + SH)); b_hid = rnd(ks[16], (H,))
    w_out_pt = rnd(ks[17], (num_classes, H)); b_out = rnd(ks[18], (num_classes,))

    bf16 = jnp.bfloat16

    # conv as a single matmul: rows ordered tap-major (k*CH_E + e)
    conv_w_mat = jnp.transpose(conv_w_pt, (2, 1, 0)).reshape(3 * CH_E, CH_H)

    # LSTM: keep only the i/g/o gate rows (zero initial cell state kills the forget gate) and
    # pack both directions into one block-diagonal (2E, 6H) matrix with columns
    # [i_f|i_b|g_f|g_b|o_f|o_b] so the fused gate matmul yields a contiguous [h_fwd | h_bwd].
    def gate_rows(w4h, b4h):
        return (w4h[0:H], w4h[2 * H:3 * H], w4h[3 * H:4 * H]), \
               (b4h[0:H], b4h[2 * H:3 * H], b4h[3 * H:4 * H])
    (wi_f, wg_f, wo_f), (bi_f, bg_f, bo_f) = gate_rows(w_ihf_pt, b_ihf + b_hhf)
    (wi_b, wg_b, wo_b), (bi_b, bg_b, bo_b) = gate_rows(w_ihb_pt, b_ihb + b_hhb)
    w_ih_blk = jnp.zeros((2 * E, 6 * H), jnp.float32)
    for col, wf, wb in ((0, wi_f, wi_b), (2, wg_f, wg_b), (4, wo_f, wo_b)):
        w_ih_blk = w_ih_blk.at[:E, col * H:(col + 1) * H].set(wf.T)
        w_ih_blk = w_ih_blk.at[E:, (col + 1) * H:(col + 2) * H].set(wb.T)
    b_ih_packed = jnp.concatenate([bi_f, bi_b, bg_f, bg_b, bo_f, bo_b])      # (6H,)

    # lane-dense head output: pad classes to a multiple of 128
    ncpad = _round_up(num_classes, 128)
    w_out_padded = jnp.zeros((H, ncpad), jnp.float32).at[:, :num_classes].set(w_out_pt.T)
    b_out_padded = jnp.zeros((ncpad,), jnp.float32).at[:num_classes].set(b_out)

    b_packed = jnp.concatenate([b_out_padded, b_ih_packed, b_mh, b_sh, b_hid]).reshape(1, -1)

    return dict(
        num_classes=num_classes,
        word_emb=word_emb,
        char_emb=char_emb,
        conv_w=conv_w_mat.astype(bf16),                  # (3*CH_E, CH_H)
        conv_b=conv_b.reshape(1, CH_H),
        w_att=w_att_pt,                                  # (1, D_in) f32 (elementwise use)
        w_mh=w_mh_pt.T.astype(bf16),                     # (D_in, H)
        w_ih_blk=w_ih_blk.astype(bf16),                  # (2E, 6H)
        w_sh=w_sh_pt.T.astype(bf16),                     # (2H, SH)
        w_hid=w_hid_pt.T.astype(bf16),                   # (H+SH, H)
        w_out=w_out_padded.astype(bf16),                 # (H, NCPAD)
        b_packed=b_packed,                               # (1, NCPAD+6H+H+SH+H) f32
    )


def atten_cnn_sent_lstm_forward(params, entity_words, entity_lengths, char_inputs,
                                char_seq_recover, sent_inputs, sent_seq_lengths):
    B, L = entity_words.shape
    CH_H = params["conv_b"].shape[-1]

    # mention-word embeddings (XLA gather is glue)
    ent_emb = params["word_emb"][entity_words]                           # (B, L, E) f32

    # char path: apply char_seq_recover to the inputs (CNN is per-word independent), so its
    # output is already in mention order -- no post-CNN HBM gather.
    ch_emb = params["char_emb"][char_inputs[char_seq_recover]]           # (B*L, C, CH_E)
    C = ch_emb.shape[1]
    xpad = jnp.pad(ch_emb, ((0, 0), (1, 1), (0, 0)))                     # conv padding = 1
    x_i2c = jnp.concatenate(                                             # pre-im2col, k = 3
        [xpad[:, 0:C, :], xpad[:, 1:C + 1, :], xpad[:, 2:C + 2, :]], axis=-1
    ).astype(jnp.bfloat16)                                               # (B*L, C, 3*CH_E)
    char_feats = char_cnn_pallas(x_i2c, params["conv_w"], params["conv_b"])
    char_feats = char_feats.reshape(B, L, CH_H)

    # sentence side (packed BiLSTM semantics): only fwd step t=0 and bwd step t=T-1 of the
    # LSTM output are consumed downstream.
    sent_emb = params["word_emb"][sent_inputs]                           # (B, S, E)
    # NOTE: host-side max mirrors pack/pad_packed_sequence; the wrapper is not jitted.
    T = int(sent_seq_lengths.max())
    x0xT = jnp.concatenate([sent_emb[:, 0, :], sent_emb[:, T - 1, :]], axis=1)   # (B, 2E)
    full_mask = (sent_seq_lengths == T).astype(jnp.float32)              # bwd output exists
    row_scalars = jnp.stack([entity_lengths.astype(jnp.float32), full_mask], axis=1)

    out = head_pallas(params, ent_emb, char_feats, row_scalars, x0xT)
    return out[:, :params["num_classes"]]


if __name__ == "__main__":
    # opt-like config (small)
    E, H, SH = 32, 32, 16           # word_emb_size, hidden_size, sent_hidden_size
    CH_E, CH_H = 20, 10             # char embedding / char hidden dims (fixed in module)
    NUM_CLASSES = 5
    VOCAB, CHAR_ALPHABET = 50, 30
    B, L, CMAX, S = 2, 8, 12, 10    # batch, mention len, max chars per word, sent len

    key = jax.random.PRNGKey(0)
    kp, k1, k2, k3, k4 = jax.random.split(key, 5)
    params = init_params(kp, VOCAB, CHAR_ALPHABET, E, H, SH, CH_E, CH_H, NUM_CLASSES)

    entity_words = jax.random.randint(k1, (B, L), 0, VOCAB, dtype=jnp.int32)
    entity_lengths = jnp.array([8, 5], dtype=jnp.int32)
    char_inputs = jax.random.randint(k2, (B * L, CMAX), 0, CHAR_ALPHABET, dtype=jnp.int32)
    char_seq_recover = jax.random.permutation(k3, B * L)
    sent_inputs = jax.random.randint(k4, (B, S), 0, VOCAB, dtype=jnp.int32)
    sent_seq_lengths = jnp.array([S, S - 3], dtype=jnp.int32)   # sorted desc (packed convention)

    out = atten_cnn_sent_lstm_forward(params, entity_words, entity_lengths, char_inputs,
                                      char_seq_recover, sent_inputs, sent_seq_lengths)
    jax.block_until_ready(out)
    assert out.shape == (B, NUM_CLASSES) and out.dtype == jnp.float32
    print("KERNEL_OK")
</pallas_src>

<mosaic_0001>
module attributes {stable_mosaic.version = 11 : i64} {
  func.func @charcnn_kernel(%arg0: i32, %arg1: memref<16x12x60xbf16, #tpu.memory_space<vmem>>, %arg2: memref<60x10xbf16, #tpu.memory_space<vmem>>, %arg3: memref<1x10xf32, #tpu.memory_space<vmem>>, %arg4: memref<16x10xf32, #tpu.memory_space<vmem>>) attributes {dimension_semantics = [#tpu.dimension_semantics<parallel>], iteration_bounds = array<i64: 1>, scalar_prefetch = 0 : i64, scratch_operands = 0 : i64, tpu.core_type = #tpu.core_type<tc>, window_params = [{transform_indices = @transform_0, window_bounds = array<i64: 16, 12, 60>}, {pipeline_mode = #tpu.pipeline_mode<synchronous>, transform_indices = @transform_1, window_bounds = array<i64: 60, 10>}, {pipeline_mode = #tpu.pipeline_mode<synchronous>, transform_indices = @transform_2, window_bounds = array<i64: 1, 10>}, {transform_indices = @transform_3, window_bounds = array<i64: 16, 10>}]} {
    %c0 = arith.constant 0 : index
    %c0_0 = arith.constant 0 : index
    %c0_1 = arith.constant 0 : index
    %0 = vector.load %arg1[%c0, %c0_0, %c0_1] : memref<16x12x60xbf16, #tpu.memory_space<vmem>>, vector<16x12x60xbf16>
    %1 = vector.shape_cast %0 : vector<16x12x60xbf16> to vector<192x60xbf16>
    %c0_2 = arith.constant 0 : index
    %c0_3 = arith.constant 0 : index
    %2 = vector.load %arg2[%c0_2, %c0_3] : memref<60x10xbf16, #tpu.memory_space<vmem>>, vector<60x10xbf16>
    %cst = arith.constant dense<0.000000e+00> : vector<192x10xf32>
    %3 = tpu.matmul %1, %2, %cst {dimension_numbers = #tpu.dot_dimension_numbers<[1], [0], [0], [1], [0, 0, 1, 1], [], []>} : vector<192x60xbf16>, vector<60x10xbf16>, vector<192x10xf32> -> vector<192x10xf32>
    %4 = vector.shape_cast %3 : vector<192x10xf32> to vector<16x12x10xf32>
    %cst_4 = arith.constant dense<0xFF800000> : vector<16x10xf32>
    %5 = vector.multi_reduction <maximumf>, %4, %cst_4 [1] : vector<16x12x10xf32> to vector<16x10xf32>
    %c0_5 = arith.constant 0 : index
    %c0_6 = arith.constant 0 : index
    %6 = vector.load %arg3[%c0_5, %c0_6] : memref<1x10xf32, #tpu.memory_space<vmem>>, vector<1x10xf32>
    %7 = vector.broadcast %6 : vector<1x10xf32> to vector<16x10xf32>
    %8 = arith.addf %5, %7 : vector<16x10xf32>
    %c0_7 = arith.constant 0 : index
    %c0_8 = arith.constant 0 : index
    %9 = vector.load %arg4[%c0_7, %c0_8] : memref<16x10xf32, #tpu.memory_space<vmem>>, vector<16x10xf32>
    tpu.vector_store %arg4[%c0_7, %c0_8], %8 {strides = array<i32>} : memref<16x10xf32, #tpu.memory_space<vmem>>, vector<16x10xf32>,
    return
  }
  func.func @transform_0(%arg0: i32) -> (i32, i32, i32) {
    %c0_i32 = arith.constant 0 : i32
    %c0_i32_0 = arith.constant 0 : i32
    %c0_i32_1 = arith.constant 0 : i32
    return %arg0, %c0_i32, %c0_i32_0 : i32, i32, i32
  }
  func.func @transform_1(%arg0: i32) -> (i32, i32) {
    %c0_i32 = arith.constant 0 : i32
    %c0_i32_0 = arith.constant 0 : i32
    %c0_i32_1 = arith.constant 0 : i32
    return %c0_i32, %c0_i32_0 : i32, i32
  }
  func.func @transform_2(%arg0: i32) -> (i32, i32) {
    %c0_i32 = arith.constant 0 : i32
    %c0_i32_0 = arith.constant 0 : i32
    %c0_i32_1 = arith.constant 0 : i32
    return %c0_i32, %c0_i32_0 : i32, i32
  }
  func.func @transform_3(%arg0: i32) -> (i32, i32) {
    %c0_i32 = arith.constant 0 : i32
    %c0_i32_0 = arith.constant 0 : i32
    return %arg0, %c0_i32 : i32, i32
  }
}

</mosaic_0001>

<bundles_post_ra>
// kernel: tpu_custom_call.1
= control target key start
LH: loop header
LB: loop body
LE: loop exit
PB: predicated region body
PF: predicated region fallthrough
CT: control target
= control target key end

     0   :  { %vm592_vm0 = vcmask 1045504   ;;  %v333_v2 = vlaneseq  ;;  %v1190_v8 = vmov 1983009808   ;;  %s1476_s0 = inlined_call_operand.vmem [shape: bf16[16,12,60], index: 0, kind: input, shape index: {}]   ;;  %s1477_s1 = inlined_call_operand.vmem [shape: bf16[60,10], index: 1, kind: input, shape index: {}]   ;;  %s1478_s2 = inlined_call_operand.vmem [shape: f32[1,10], index: 2, kind: input, shape index: {}]   ;;  %s1479_s3 = inlined_call_operand.hbm [shape: f32[16,10], index: 3, kind: output, shape index: {}]  }
   0x1   :  { %v1164_v0 = vld [vmem:[%s1477_s1 + $0x18] sm:$0x3f]   ;;  %v1165_v1 = vld [vmem:[%s1477_s1 + $0x10] sm:$0xff]   ;;  %v1166_v4 = vld [vmem:[%s1477_s1 + $0x8] sm:$0xff]   ;;  %v331_v9 = vunpack.c.l.s4 %v1190_v8 }
   0x2   :  { %1158 = vmatprep.subr.msk.bf16.mxu0 %vm592_vm0, %v1164_v0  ;;  %1159 = vmatprep.subr.msk.bf16.mxu1 %vm592_vm0, %v1164_v0  ;;  %v594_v3 = vsel %vm592_vm0, %v1164_v0, 0  ;;  %v1053_v5 = vld.sshfl [vmem:[%s1476_s0] sm:$0x33 pattern:$0x76325410]  ;;  %v334_v10 = vshrl.u32 %v333_v2, 7 }
   0x3   :  { %1119 = vmatpush3.bf16.msra.mxu0 %v594_v3  ;;  %1154 = vmatpush3.bf16.msra.mxu1 %v594_v3  ;;  %v1054_v6 = vld.sshfl [vmem:[%s1476_s0 + $0x4] sm:$0x3 pattern:$0x76325410]  ;;  %v87_v7 = vcombine.high %v1053_v5, %v1053_v5 }
   0x4   :  { %1120 = vmatprep.subr.bf16.mxu0 %v1165_v1  ;;  %1151 = vmatprep.subr.bf16.mxu1 %v1165_v1  ;;  %v1055_v11 = vld.sshfl [vmem:[%s1476_s0 + $0x8] sm:$0x33 pattern:$0x76325410] }
   0x5   :  { %8 = vsyncpa [#allocation3], 0  ;;  %v1056_v12 = vld.sshfl [vmem:[%s1476_s0 + $0xc] sm:$0x3 pattern:$0x76325410]  ;;  %v102_v13 = vcombine.high %v1055_v11, %v1055_v11  ;;  %v328_v14 = vcombine.low %v1053_v5, %v87_v7  ;;  %v329_v15 = vcombine.low %v1054_v6, %v1055_v11  ;;  %v332_v16 = vunpack.c.0.s8 %v331_v9 }
   0x6   :  { %v1167_v17 = vld [vmem:[%s1477_s1] sm:$0xff]   ;;  %v1071_v23 = vld.sshfl [vmem:[%s1476_s0 + $0x48] sm:$0x33 pattern:$0x76325410]  ;;  %vm555_vm1 = vcmask 490496  }
   0x7   :  { %1121 = vmatpush3.bf16.msra.mxu0 %v1165_v1  ;;  %1155 = vmatpush3.bf16.msra.mxu1 %v1165_v1  ;;  %v1069_v18 = vld.sshfl [vmem:[%s1476_s0 + $0x40] sm:$0x33 pattern:$0x76325410]  ;;  %v1241_v19 = vsub.s32 %v332_v16, %v334_v10  ;;  %v345_v22 = vcombine.low %v102_v13, %v1056_v12  ;;  %v222_v27 = vcombine.high %v1071_v23, %v1071_v23  ;;  %vm813_vm2 = vcmask 80896  }
   0x8   :  { %1122 = vmatprep.subr.bf16.mxu0 %v1166_v4  ;;  %1152 = vmatprep.subr.bf16.mxu1 %v1166_v4  ;;  %v1070_v20 = vld.sshfl [vmem:[%s1476_s0 + $0x44] sm:$0x3 pattern:$0x76325410]  ;;  %v207_v21 = vcombine.high %v1069_v18, %v1069_v18  ;;  %vm815_vm3 = vcmask 76800   ;;  %vm999_vm4 = vcmask 1041409  }
   0x9   :  { %v336_v24 = vrot.slane %v328_v14, %v1241_v19  ;;  %v343_v25 = vrot.slane %v329_v15, %v1241_v19  ;;  %v1072_v26 = vld.sshfl [vmem:[%s1476_s0 + $0x4c] sm:$0x3 pattern:$0x76325410]  ;;  %v431_v29 = vcombine.low %v1070_v20, %v1071_v23  ;;  %v353_v40 = vrot.slane %v345_v22, %v1241_v19 }
   0xa   :  { %v430_v28 = vcombine.low %v1069_v18, %v207_v21  ;;  %v1057_v30 = vld.sshfl [vmem:[%s1476_s0 + $0x10] sm:$0x33 pattern:$0x76325410]  ;;  %v447_v32 = vcombine.low %v222_v27, %v1072_v26  ;;  %vm1002_vm5 = vcmask 1042434   ;;  %vm1005_vm6 = vcmask 1043459  }
   0xb   :  { %1123 = vmatpush3.bf16.msra.mxu0 %v1166_v4  ;;  %1156 = vmatpush3.bf16.msra.mxu1 %v1166_v4  ;;  %v344_v31 = vcombine.low %v336_v24, %v343_v25  ;;  %v117_v33 = vcombine.high %v1057_v30, %v1057_v30  ;;  %v1073_v34 = vld.sshfl [vmem:[%s1476_s0 + $0x50] sm:$0x33 pattern:$0x76325410]  ;;  %v445_v36 = vrot.slane %v431_v29, %v1241_v19  ;;  %vm1008_vm7 = vcmask 1044484  }
   0xc   :  { %1124 = vmatprep.subr.bf16.mxu0 %v1167_v17  ;;  %1153 = vmatprep.subr.bf16.mxu1 %v1167_v17  ;;  %v438_v35 = vrot.slane %v430_v28, %v1241_v19  ;;  %v237_v37 = vcombine.high %v1073_v34, %v1073_v34  ;;  %v1058_v38 = vld.sshfl [vmem:[%s1476_s0 + $0x14] sm:$0x3 pattern:$0x76325410]  ;;  %v455_v41 = vrot.slane %v447_v32, %v1241_v19  ;;  %vm1011_vm8 = vcmask 1045509  }
   0xd   :  { %v346_v39 = vcombine.low %v1057_v30, %v117_v33  ;;  %v1059_v42 = vld.sshfl [vmem:[%s1476_s0 + $0x18] sm:$0x33 pattern:$0x76325410]  ;;  %1126 = vmatprep.mubr.msk.bf16.mxu0 %vm555_vm1, %v344_v31  ;;  %vm1014_vm9 = vcmask 1046534   ;;  %vm1017_vm10 = vcmask 1047559  }
   0xe   :  { %v446_v43 = vcombine.low %v438_v35, %v445_v36  ;;  %v448_v44 = vcombine.low %v1073_v34, %v237_v37  ;;  %v1060_v45 = vld.sshfl [vmem:[%s1476_s0 + $0x1c] sm:$0x3 pattern:$0x76325410]  ;;  %v132_v46 = vcombine.high %v1059_v42, %v1059_v42  ;;  %v362_v47 = vcombine.low %v1058_v38, %v1059_v42 }
   0xf   :  { %1125 = vmatpush3.bf16.msra.mxu0 %v1167_v17  ;;  %1157 = vmatpush3.bf16.msra.mxu1 %v1167_v17  ;;  %v360_v48 = vrot.slane %v346_v39, %v1241_v19  ;;  %v1074_v49 = vld.sshfl [vmem:[%s1476_s0 + $0x54] sm:$0x3 pattern:$0x76325410] }
  0x10   :  { %1138 = vmatprep.mubr.msk.bf16.mxu1 %vm555_vm1, %v446_v43  ;;  %v462_v50 = vrot.slane %v448_v44, %v1241_v19  ;;  %v363_v51 = vcombine.low %v132_v46, %v1060_v45  ;;  %v370_v52 = vrot.slane %v362_v47, %v1241_v19  ;;  %v1075_v53 = vld.sshfl [vmem:[%s1476_s0 + $0x58] sm:$0x33 pattern:$0x76325410] }
  0x11   :  { %v361_v54 = vcombine.low %v353_v40, %v360_v48  ;;  %v1076_v55 = vld.sshfl [vmem:[%s1476_s0 + $0x5c] sm:$0x3 pattern:$0x76325410]  ;;  %v252_v56 = vcombine.high %v1075_v53, %v1075_v53  ;;  %v464_v57 = vcombine.low %v1074_v49, %v1075_v53 }
  0x12   :  { %v463_v58 = vcombine.low %v455_v41, %v462_v50  ;;  %v377_v59 = vrot.slane %v363_v51, %v1241_v19  ;;  %v1061_v60 = vld.sshfl [vmem:[%s1476_s0 + $0x20] sm:$0x33 pattern:$0x76325410] }
  0x13   :  { %1127 = vmatmul.mubr.msk.bf16.vlgmr.msra.gmra.mxu0 %vm555_vm1, %v361_v54  ;;  %v465_v61 = vcombine.low %v252_v56, %v1076_v55  ;;  %v472_v62 = vrot.slane %v464_v57, %v1241_v19  ;;  %v1062_v63 = vld.sshfl [vmem:[%s1476_s0 + $0x24] sm:$0x3 pattern:$0x76325410]  ;;  %v147_v0 = vcombine.high %v1061_v60, %v1061_v60 }
  0x14   :  { %1139 = vmatmul.mubr.msk.bf16.vlgmr.msra.gmra.mxu1 %vm555_vm1, %v463_v58  ;;  %v378_v1 = vcombine.low %v370_v52, %v377_v59  ;;  %v1063_v2 = vld.sshfl [vmem:[%s1476_s0 + $0x28] sm:$0x33 pattern:$0x76325410] }
  0x15   :  { %v479_v3 = vrot.slane %v465_v61, %v1241_v19  ;;  %v379_v4 = vcombine.low %v1061_v60, %v147_v0  ;;  %v380_v5 = vcombine.low %v1062_v63, %v1063_v2  ;;  %v1077_v6 = vld.sshfl [vmem:[%s1476_s0 + $0x60] sm:$0x33 pattern:$0x76325410]  ;;  %v162_v7 = vcombine.high %v1063_v2, %v1063_v2 }
  0x16   :  { %1130 = vmatprep.mubr.msk.bf16.mxu0 %vm555_vm1, %v378_v1  ;;  %v1078_v8 = vld.sshfl [vmem:[%s1476_s0 + $0x64] sm:$0x3 pattern:$0x76325410]  ;;  %v267_v9 = vcombine.high %v1077_v6, %v1077_v6 }
  0x17   :  { %v480_v10 = vcombine.low %v472_v62, %v479_v3  ;;  %v387_v11 = vrot.slane %v379_v4, %v1241_v19  ;;  %v394_v12 = vrot.slane %v380_v5, %v1241_v19  ;;  %v1079_v13 = vld.sshfl [vmem:[%s1476_s0 + $0x68] sm:$0x33 pattern:$0x76325410] }
  0x18   :  { %v481_v14 = vcombine.low %v1077_v6, %v267_v9  ;;  %v482_v15 = vcombine.low %v1078_v8, %v1079_v13  ;;  %v1064_v16 = vld.sshfl [vmem:[%s1476_s0 + $0x2c] sm:$0x3 pattern:$0x76325410]  ;;  %v282_v17 = vcombine.high %v1079_v13, %v1079_v13 }
  0x19   :  { %1142 = vmatprep.mubr.msk.bf16.mxu1 %vm555_vm1, %v480_v10  ;;  %v395_v18 = vcombine.low %v387_v11, %v394_v12  ;;  %v1065_v20 = vld.sshfl [vmem:[%s1476_s0 + $0x30] sm:$0x33 pattern:$0x76325410]  ;;  %v396_v21 = vcombine.low %v162_v7, %v1064_v16 }
  0x1a   :  { %v489_v22 = vrot.slane %v481_v14, %v1241_v19  ;;  %v496_v23 = vrot.slane %v482_v15, %v1241_v19  ;;  %v177_v24 = vcombine.high %v1065_v20, %v1065_v20  ;;  %v1080_v25 = vld.sshfl [vmem:[%s1476_s0 + $0x6c] sm:$0x3 pattern:$0x76325410] }
  0x1b   :  { %1131 = vmatmul.mubr.msk.bf16.gmra.mxu0 %vm555_vm1, %v395_v18  ;;  %v1081_v26 = vld.sshfl [vmem:[%s1476_s0 + $0x70] sm:$0x33 pattern:$0x76325410]  ;;  %v498_v27 = vcombine.low %v282_v17, %v1080_v25  ;;  %v404_v30 = vrot.slane %v396_v21, %v1241_v19 }
  0x1c   :  { %v497_v28 = vcombine.low %v489_v22, %v496_v23  ;;  %v397_v29 = vcombine.low %v1065_v20, %v177_v24  ;;  %v297_v31 = vcombine.high %v1081_v26, %v1081_v26  ;;  %v1066_v32 = vld.sshfl [vmem:[%s1476_s0 + $0x34] sm:$0x3 pattern:$0x76325410] }
  0x1d   :  { %v506_v33 = vrot.slane %v498_v27, %v1241_v19  ;;  %v1067_v34 = vld.sshfl [vmem:[%s1476_s0 + $0x38] sm:$0x33 pattern:$0x76325410] }
  0x1e   :  { %1143 = vmatmul.mubr.msk.bf16.gmra.mxu1 %vm555_vm1, %v497_v28  ;;  %v411_v35 = vrot.slane %v397_v29, %v1241_v19  ;;  %v499_v36 = vcombine.low %v1081_v26, %v297_v31  ;;  %v1068_v37 = vld.sshfl [vmem:[%s1476_s0 + $0x3c] sm:$0x3 pattern:$0x76325410]  ;;  %v192_v38 = vcombine.high %v1067_v34, %v1067_v34  ;;  %v413_v39 = vcombine.low %v1066_v32, %v1067_v34 }
  0x1f   :  { %v1082_v40 = vld.sshfl [vmem:[%s1476_s0 + $0x74] sm:$0x3 pattern:$0x76325410] }
  0x20   :  { %v412_v41 = vcombine.low %v404_v30, %v411_v35  ;;  %v513_v42 = vrot.slane %v499_v36, %v1241_v19  ;;  %v414_v43 = vcombine.low %v192_v38, %v1068_v37  ;;  %v421_v44 = vrot.slane %v413_v39, %v1241_v19  ;;  %v1083_v45 = vld.sshfl [vmem:[%s1476_s0 + $0x78] sm:$0x33 pattern:$0x76325410] }
  0x21   :  { %v1084_v46 = vld.sshfl [vmem:[%s1476_s0 + $0x7c] sm:$0x3 pattern:$0x76325410]  ;;  %v312_v47 = vcombine.high %v1083_v45, %v1083_v45  ;;  %v515_v48 = vcombine.low %v1082_v40, %v1083_v45 }
  0x22   :  { %1134 = vmatprep.mubr.msk.bf16.mxu0 %vm555_vm1, %v412_v41  ;;  %v514_v49 = vcombine.low %v506_v33, %v513_v42  ;;  %v428_v50 = vrot.slane %v414_v43, %v1241_v19 }
  0x23   :  { %v516_v51 = vcombine.low %v312_v47, %v1084_v46  ;;  %v523_v52 = vrot.slane %v515_v48, %v1241_v19 }
  0x24   :  { %1146 = vmatprep.mubr.msk.bf16.mxu1 %vm555_vm1, %v514_v49  ;;  %v429_v53 = vcombine.low %v421_v44, %v428_v50 }
  0x25   :  { %v530_v54 = vrot.slane %v516_v51, %v1241_v19 }
  0x26   :  { %1135 = vmatmul.mubr.msk.bf16.gmra.mxu0 %vm555_vm1, %v429_v53 }
  0x27   :  { %v531_v55 = vcombine.low %v523_v52, %v530_v54 }
  0x29   :  { %1147 = vmatmul.mubr.msk.bf16.gmra.mxu1 %vm555_vm1, %v531_v55 }
  0xd3   :  { %v1128_v56 = vpop.f32.mrf.mxu0 }
  0xd4   :  { %v1140_v57 = vpop.f32.mrf.mxu1  ;;  %v751_v63 = vcombine.high %v1128_v56, %v1128_v56 }
  0xd5   :  { %v630_v58 = vpop.f32.mrf.mxu0  ;;  %v763_v3 = vcombine.high %v1140_v57, %v1140_v57 }
  0xd6   :  { %v749_v59 = vcombine.high %v630_v58, %v630_v58  ;;  %v678_v60 = vpop.f32.mrf.mxu1  ;;  %v825_v15 = vsel %vm815_vm3, %v751_v63, -inf }
  0xd7   :  { %v761_v61 = vcombine.high %v678_v60, %v678_v60  ;;  %v1129_v62 = vpop.f32.mrf.mxu0  ;;  %v897_v25 = vsel %vm815_vm3, %v763_v3, -inf }
  0xd8   :  { %v781_v0 = vcombine.low %v630_v58, %v749_v59  ;;  %v752_v1 = vcombine.high %v1129_v62, %v1129_v62  ;;  %v1141_v2 = vpop.f32.mrf.mxu1 }
  0xd9   :  { %v789_v19 = vcombine.low %v678_v60, %v761_v61  ;;  %v764_v4 = vcombine.high %v1141_v2, %v1141_v2  ;;  %v633_v5 = vpop.f32.mrf.mxu0 }
  0xda   :  { %v783_v6 = vcombine.low %v1129_v62, %v752_v1  ;;  %v750_v7 = vcombine.high %v633_v5, %v633_v5  ;;  %v814_v8 = vsel %vm813_vm2, %v781_v0, -inf  ;;  %v816_v9 = vsel %vm815_vm3, %v633_v5, -inf  ;;  %v681_v10 = vpop.f32.mrf.mxu1 }
  0xdb   :  { %v817_v11 = vmax.f32 %v814_v8, %v816_v9  ;;  %v762_v12 = vcombine.high %v681_v10, %v681_v10  ;;  %v887_v13 = vsel %vm813_vm2, %v789_v19, -inf  ;;  %v1132_v14 = vpop.f32.mrf.mxu0  ;;  %v888_v17 = vsel %vm815_vm3, %v681_v10, -inf }
  0xdc   :  { %v782_v16 = vcombine.low %v750_v7, %v1128_v56  ;;  %v755_v18 = vcombine.high %v1132_v14, %v1132_v14  ;;  %v791_v20 = vcombine.low %v1141_v2, %v764_v4  ;;  %v889_v23 = vmax.f32 %v887_v13, %v888_v17 }
  0xdd   :  { %v818_v21 = vrot.slane %v817_v11, 4  ;;  %v790_v22 = vcombine.low %v762_v12, %v1140_v57  ;;  %v646_v24 = vpop.f32.mrf.mxu0  ;;  %v833_v28 = vsel %vm813_vm2, %v783_v6, -inf }
  0xde   :  { %v824_v26 = vsel %vm813_vm2, %v782_v16, -inf  ;;  %v1144_v27 = vpop.f32.mrf.mxu1  ;;  %v834_v29 = vsel %vm815_vm3, %v646_v24, -inf  ;;  %v890_v32 = vrot.slane %v889_v23, 4  ;;  %v785_v35 = vcombine.low %v1132_v14, %v755_v18 }
  0xdf   :  { %v819_v30 = vmax.f32 %v817_v11, %v818_v21  ;;  %v826_v31 = vmax.f32 %v824_v26, %v825_v15  ;;  %v896_v33 = vsel %vm813_vm2, %v790_v22, -inf  ;;  %v835_v36 = vmax.f32 %v833_v28, %v834_v29  ;;  %v1373_v41 = vpop.f32.mrf.mxu0  ;;  %v1393_v28 = vld [vmem:[%s1478_s2] ss:$0 sm:$0xff]  ;;  %s1191_s2 = smov [#allocation2]  }
  0xe0   :  { %v898_v34 = vmax.f32 %v896_v33, %v897_v25  ;;  %v1370_v37 = vpop.f32.mrf.mxu1  ;;  %v891_v39 = vmax.f32 %v889_v23, %v890_v32  ;;  %v905_v40 = vsel %vm813_vm2, %v791_v20, -inf  ;;  %v767_v43 = vcombine.high %v1144_v27, %v1144_v27  ;;  %s1042_s29 = sshll.u32 %s1191_s2, 4  ;;  %s1043_s29 = int_to_ptr.vmem [resolvable:$true] %s1042_s29 }
  0xe1   :  { %v827_v38 = vrot.slane %v826_v31, 4  ;;  %v836_v44 = vrot.slane %v835_v36, 4  ;;  %v906_v45 = vsel %vm815_vm3, %v1370_v37, -inf  ;;  %v820_v46 = vrot.slane %v819_v30, 2  ;;  %v649_v3 = vpop.f32.mrf.mxu0  ;;  %s1168_s30 = scalar_lea.vmem %s1043_s29, 256  ;;  %p1173_p1 = scmp.lt.s32.totalorder %s1043_s29, %s1043_s29 }
  0xe2   :  { %v899_v42 = vrot.slane %v898_v34, 4  ;;  %v892_v48 = vrot.slane %v891_v39, 2  ;;  %v907_v49 = vmax.f32 %v905_v40, %v906_v45  ;;  %v851_v52 = vsel %vm813_vm2, %v785_v35, -inf  ;;  %v1145_v0 = vpop.f32.mrf.mxu1  ;;  %p1169_p0 = scmp.ne.s32.totalorder %s1043_s29, %s1168_s30  ;;  %p1174_p2 = scmp.lt.s32.totalorder %s1168_s30, %s1168_s30 }
  0xe3   :  { %v828_v47 = vmax.f32 %v826_v31, %v827_v38  ;;  %v837_v51 = vmax.f32 %v835_v36, %v836_v44  ;;  %v852_v53 = vsel %vm815_vm3, %v1373_v41, -inf  ;;  %v821_v61 = vmax.f32 %v819_v30, %v820_v46 }
  0xe4   :  { %v900_v50 = vmax.f32 %v898_v34, %v899_v42  ;;  %v908_v55 = vrot.slane %v907_v49, 4  ;;  %v853_v58 = vmax.f32 %v851_v52, %v852_v53  ;;  %v893_v62 = vmax.f32 %v891_v39, %v892_v48  ;;  %v697_v11 = vpop.f32.mrf.mxu1  ;;  %p1175_p3 = por %p1174_p2, %p1173_p1 }
  0xe5   :  { %v829_v54 = vrot.slane %v828_v47, 2  ;;  %v838_v57 = vrot.slane %v837_v51, 2  ;;  %v793_v63 = vcombine.low %v1144_v27, %v767_v43  ;;  %v753_v5 = vcombine.high %v646_v24, %v646_v24 }
  0xe6   :  { %v901_v56 = vrot.slane %v900_v50, 2  ;;  %v909_v60 = vmax.f32 %v907_v49, %v908_v55  ;;  %v854_v4 = vrot.slane %v853_v58, 4  ;;  %v822_v7 = vrot.slane %v821_v61, 1  ;;  %v1382_v16 = vpop.f32.mrf.mxu0  ;;  %p1176_p4 = pnand %p1175_p3, %p1169_p0 }
  0xe7   :  { %v830_v59 = vmax.f32 %v828_v47, %v829_v54  ;;  %v839_v2 = vmax.f32 %v837_v51, %v838_v57  ;;  %v894_v8 = vrot.slane %v893_v62, 1  ;;  %v923_v9 = vsel %vm813_vm2, %v793_v63, -inf }
  0xe8   :  { %v902_v1 = vmax.f32 %v900_v50, %v901_v56  ;;  %v910_v6 = vrot.slane %v909_v60, 2  ;;  %v754_v10 = vcombine.high %v649_v3, %v649_v3  ;;  %v924_v14 = vsel %vm815_vm3, %v1145_v0, -inf  ;;  %v662_v33 = vpop.f32.mrf.mxu0 }
  0xe9   :  { %v831_v19 = vrot.slane %v830_v59, 1  ;;  %v840_v13 = vrot.slane %v839_v2, 1  ;;  %v784_v15 = vcombine.low %v753_v5, %v649_v3  ;;  %v855_v18 = vmax.f32 %v853_v58, %v854_v4  ;;  %v1388_v27 = vpop.f32.mrf.mxu1 }
  0xea   :  { %v903_v12 = vrot.slane %v902_v1, 1  ;;  %v843_v20 = vsel %vm815_vm3, %v754_v10, -inf  ;;  %v911_v21 = vmax.f32 %v909_v60, %v910_v6  ;;  %v823_v23 = vmax.f32 %v821_v61, %v822_v7  ;;  %v1137_v50 = vpop.f32.mrf.mxu0 }
  0xeb   :  { %v832_v17 = vmax.f32 %v830_v59, %v831_v19  ;;  %v842_v22 = vsel %vm813_vm2, %v784_v15, -inf  ;;  %v765_v24 = vcombine.high %v1370_v37, %v1370_v37  ;;  %v925_v25 = vmax.f32 %v923_v9, %v924_v14  ;;  %v710_v46 = vpop.f32.mrf.mxu1 }
  0xec   :  { %v844_v26 = vmax.f32 %v842_v22, %v843_v20  ;;  %v895_v29 = vmax.f32 %v893_v62, %v894_v8  ;;  %v904_v30 = vmax.f32 %v902_v1, %v903_v12  ;;  %v841_v31 = vmax.f32 %v839_v2, %v840_v13  ;;  %v665_v7 = vpop.f32.mrf.mxu0 }
  0xed   :  { %v766_v32 = vcombine.high %v697_v11, %v697_v11  ;;  %v1396_v34 = vadd.f32 %v1393_v28, %v832_v17  ;;  %v856_v35 = vrot.slane %v855_v18, 2  ;;  %v912_v37 = vrot.slane %v911_v21, 1  ;;  %v1149_v3 = vpop.f32.mrf.mxu1 }
  0xee   :  { %v845_v36 = vrot.slane %v844_v26, 4  ;;  %v756_v38 = vcombine.high %v1373_v41, %v1373_v41  ;;  %v792_v39 = vcombine.low %v765_v24, %v697_v11  ;;  %v1402_v42 = vadd.f32 %v1393_v28, %v823_v23 }
  0xef   :  { %v915_v40 = vsel %vm815_vm3, %v766_v32, -inf  ;;  %v768_v43 = vcombine.high %v1145_v0, %v1145_v0  ;;  %v926_v44 = vrot.slane %v925_v25, 4  ;;  %v1405_v47 = vadd.f32 %v1393_v28, %v895_v29 }
  0xf0   :  { %v846_v45 = vmax.f32 %v844_v26, %v845_v36  ;;  %v1408_v48 = vadd.f32 %v1393_v28, %v904_v30  ;;  %v1411_v49 = vadd.f32 %v1393_v28, %v841_v31  ;;  %v914_v41 = vsel %vm813_vm2, %v792_v39, -inf  ;;  %v713_v26 = vpop.f32.mrf.mxu1 }
  0xf1   :  { %v998_v51 = vrot.slane %v1396_v34, 7  ;;  %v1415_v52 = vmax.f32 %v855_v18, %v856_v35  ;;  %v916_v54 = vmax.f32 %v914_v41, %v915_v40  ;;  %v1417_v55 = vmax.f32 %v911_v21, %v912_v37 }
  0xf2   :  { %v847_v53 = vrot.slane %v846_v45, 2  ;;  %v757_v56 = vcombine.high %v662_v33, %v662_v33  ;;  %v786_v57 = vcombine.low %v756_v38, %v662_v33  ;;  %v769_v58 = vcombine.high %v710_v46, %v710_v46 }
  0xf3   :  { %v927_v59 = vmax.f32 %v925_v25, %v926_v44  ;;  %v917_v60 = vrot.slane %v916_v54, 4  ;;  %v794_v61 = vcombine.low %v768_v43, %v710_v46  ;;  %v760_v62 = vcombine.high %v1137_v50, %v1137_v50 }
  0xf4   :  { %v759_v63 = vcombine.high %v1382_v16, %v1382_v16  ;;  %v860_v0 = vsel %vm813_vm2, %v786_v57, -inf  ;;  %v861_v1 = vsel %vm815_vm3, %v757_v56, -inf  ;;  %v933_v2 = vsel %vm815_vm3, %v769_v58, -inf }
  0xf5   :  { %v848_v19 = vmax.f32 %v846_v45, %v847_v53  ;;  %v918_v4 = vmax.f32 %v916_v54, %v917_v60  ;;  %v862_v5 = vmax.f32 %v860_v0, %v861_v1  ;;  %v932_v6 = vsel %vm813_vm2, %v794_v61, -inf }
  0xf6   :  { %v771_v8 = vcombine.high %v1388_v27, %v1388_v27  ;;  %v934_v9 = vmax.f32 %v932_v6, %v933_v2  ;;  %v788_v10 = vcombine.low %v759_v63, %v1137_v50  ;;  %v879_v11 = vsel %vm815_vm3, %v760_v62, -inf }
  0xf7   :  { %v858_v12 = vrot.slane %v1415_v52, 1  ;;  %v919_v13 = vrot.slane %v918_v4, 2  ;;  %v863_v14 = vrot.slane %v862_v5, 4  ;;  %v772_v15 = vcombine.high %v1149_v3, %v1149_v3 }
  0xf8   :  { %v935_v17 = vrot.slane %v934_v9, 4  ;;  %v878_v18 = vsel %vm813_vm2, %v788_v10, -inf  ;;  %v796_v20 = vcombine.low %v771_v8, %v1149_v3  ;;  %v758_v21 = vcombine.high %v665_v7, %v665_v7 }
  0xf9   :  { %v849_v22 = vrot.slane %v848_v19, 1  ;;  %v920_v23 = vmax.f32 %v918_v4, %v919_v13  ;;  %v864_v24 = vmax.f32 %v862_v5, %v863_v14  ;;  %v880_v25 = vmax.f32 %v878_v18, %v879_v11 }
  0xfa   :  { %v936_v29 = vmax.f32 %v934_v9, %v935_v17  ;;  %v950_v30 = vsel %vm813_vm2, %v796_v20, -inf  ;;  %v951_v31 = vsel %vm815_vm3, %v772_v15, -inf  ;;  %v787_v32 = vcombine.low %v665_v7, %v758_v21 }
  0xfb   :  { %v928_v33 = vrot.slane %v927_v59, 2  ;;  %v870_v35 = vsel %vm815_vm3, %v1382_v16, -inf  ;;  %v865_v36 = vrot.slane %v864_v24, 2  ;;  %v881_v37 = vrot.slane %v880_v25, 4 }
  0xfc   :  { %v937_v38 = vrot.slane %v936_v29, 2  ;;  %v952_v39 = vmax.f32 %v950_v30, %v951_v31  ;;  %v869_v40 = vsel %vm813_vm2, %v787_v32, -inf  ;;  %v770_v43 = vcombine.high %v713_v26, %v713_v26 }
  0xfd   :  { %v850_v44 = vmax.f32 %v848_v19, %v849_v22  ;;  %v921_v45 = vrot.slane %v920_v23, 1  ;;  %v866_v46 = vmax.f32 %v864_v24, %v865_v36  ;;  %v882_v41 = vmax.f32 %v880_v25, %v881_v37 }
  0xfe   :  { %v938_v50 = vmax.f32 %v936_v29, %v937_v38  ;;  %v953_v53 = vrot.slane %v952_v39, 4  ;;  %v871_v54 = vmax.f32 %v869_v40, %v870_v35  ;;  %v795_v56 = vcombine.low %v713_v26, %v770_v43 }
  0xff   :  { %v1019_v57 = vrot.slane %v1408_v48, 7  ;;  %v929_v16 = vmax.f32 %v927_v59, %v928_v33  ;;  %v867_v58 = vrot.slane %v866_v46, 1  ;;  %v883_v60 = vrot.slane %v882_v41, 2 }
 0x100   :  { %v942_v61 = vsel %vm815_vm3, %v1388_v27, -inf  ;;  %v954_v62 = vmax.f32 %v952_v39, %v953_v53  ;;  %v872_v63 = vrot.slane %v871_v54, 4  ;;  %v941_v0 = vsel %vm813_vm2, %v795_v56, -inf }
 0x101   :  { %v859_v1 = vmax.f32 %v1415_v52, %v858_v12  ;;  %v969_v2 = vadd.f32 %v1393_v28, %v850_v44  ;;  %v884_v3 = vmax.f32 %v882_v41, %v883_v60  ;;  %v943_v19 = vmax.f32 %v941_v0, %v942_v61 }
 0x102   :  { %v922_v4 = vmax.f32 %v920_v23, %v921_v45  ;;  %v939_v5 = vrot.slane %v938_v50, 1  ;;  %v955_v6 = vrot.slane %v954_v62, 2  ;;  %v873_v48 = vmax.f32 %v871_v54, %v872_v63 }
 0x103   :  { %v930_v59 = vrot.slane %v929_v16, 1  ;;  %v868_v7 = vmax.f32 %v866_v46, %v867_v58  ;;  %v885_v8 = vrot.slane %v884_v3, 1  ;;  %v944_v9 = vrot.slane %v943_v19, 4 }
 0x104   :  { %v1000_v27 = vsel %vm999_vm4, %v998_v51, %v1402_v42  ;;  %v1001_v10 = vrot.slane %v1411_v49, 6  ;;  %v956_v52 = vmax.f32 %v954_v62, %v955_v6  ;;  %v874_v11 = vrot.slane %v873_v48, 2 }
 0x105   :  { %v976_v12 = vadd.f32 %v1393_v28, %v1417_v55  ;;  %v970_v13 = vadd.f32 %v1393_v28, %v859_v1  ;;  %v1004_v14 = vrot.slane %v969_v2, 5  ;;  %v945_v15 = vmax.f32 %v943_v19, %v944_v9 }
 0x106   :  { %v977_v17 = vadd.f32 %v1393_v28, %v922_v4  ;;  %v940_v18 = vmax.f32 %v938_v50, %v939_v5  ;;  %v957_v20 = vrot.slane %v956_v52, 1  ;;  %v875_v21 = vmax.f32 %v873_v48, %v874_v11 }
 0x107   :  { %v931_v22 = vmax.f32 %v929_v16, %v930_v59  ;;  %v971_v34 = vadd.f32 %v1393_v28, %v868_v7  ;;  %v886_v42 = vmax.f32 %v884_v3, %v885_v8  ;;  %v946_v51 = vrot.slane %v945_v15, 2 }
 0x108   :  { %v1020_v49 = vsel %vm999_vm4, %v1019_v57, %v1405_v47  ;;  %v1003_v23 = vsel %vm1002_vm5, %v1001_v10, %v1000_v27  ;;  %v876_v55 = vrot.slane %v875_v21, 1  ;;  %v1021_v24 = vrot.slane %v976_v12, 6 }
 0x109   :  { %v1007_v25 = vrot.slane %v970_v13, 4  ;;  %v1006_v26 = vsel %vm1005_vm6, %v1004_v14, %v1003_v23  ;;  %v947_v29 = vmax.f32 %v945_v15, %v946_v51  ;;  %v1023_v30 = vrot.slane %v977_v17, 5 }
 0x10a   :  { %v979_v31 = vadd.f32 %v1393_v28, %v940_v18  ;;  %v958_v32 = vmax.f32 %v956_v52, %v957_v20  ;;  %v877_v33 = vmax.f32 %v875_v21, %v876_v55  ;;  %v978_v35 = vadd.f32 %v1393_v28, %v931_v22 }
 0x10b   :  { %v1010_v36 = vrot.slane %v971_v34, 3  ;;  %v973_v37 = vadd.f32 %v1393_v28, %v886_v42  ;;  %v948_v47 = vrot.slane %v947_v29, 1  ;;  %v1022_v39 = vsel %vm1002_vm5, %v1021_v24, %v1020_v49 }
 0x10c   :  { %v972_v38 = vadd.f32 %v1393_v28, %v877_v33  ;;  %v1009_v43 = vsel %vm1008_vm7, %v1007_v25, %v1006_v26  ;;  %v1024_v44 = vsel %vm1005_vm6, %v1023_v30, %v1022_v39  ;;  %v1027_v45 = vrot.slane %v979_v31, 3 }
 0x10d   :  { %v949_v40 = vmax.f32 %v947_v29, %v948_v47  ;;  %v981_v46 = vadd.f32 %v1393_v28, %v958_v32  ;;  %v1025_v50 = vrot.slane %v978_v35, 4  ;;  %v1016_v53 = vrot.slane %v973_v37, 1 }
 0x10e   :  { %v1013_v41 = vrot.slane %v972_v38, 2  ;;  %v1012_v56 = vsel %vm1011_vm8, %v1010_v36, %v1009_v43 }
 0x10f   :  { %v980_v54 = vadd.f32 %v1393_v28, %v949_v40  ;;  %v1026_v60 = vsel %vm1008_vm7, %v1025_v50, %v1024_v44  ;;  %v1031_v61 = vrot.slane %v981_v46, 1 }
 0x110   :  { %v1015_v57 = vsel %vm1014_vm9, %v1013_v41, %v1012_v56  ;;  %v1028_v62 = vsel %vm1011_vm8, %v1027_v45, %v1026_v60 }
 0x111   :  { %v1029_v16 = vrot.slane %v980_v54, 2  ;;  %v1018_v58 = vsel %vm1017_vm10, %v1016_v53, %v1015_v57 }
 0x112   :  { %1035 = vst.msk [vmem:[#allocation2] sm:$0xff] %vm813_vm2, %v1018_v58 }
 0x113   :  { %v1030_v63 = vsel %vm1014_vm9, %v1029_v16, %v1028_v62 }
 0x114   :  { %v1032_v28 = vsel %vm1017_vm10, %v1031_v61, %v1030_v63 }
 0x115   :  { %1036 = vst.msk [vmem:[#allocation2 + $0x8] sm:$0xff] %vm813_vm2, %v1032_v28 }
 0x116   :  { %1179 = shalt.err (!%p1176_p4)
}
 0x117   :  { %s1192_s4 = smov 128   ;;  %s1193_s5 = smov 8  }
 0x118   :  { %1048 = dma.vmem_to_hbm [thread:$0]  %s1043_s29, 256, %s1479_s3, [#allocation3], %s1192_s4, %s1192_s4, %s1193_s5  }
 0x119   :  { %1188 = dma.done.wait [#allocation3], 256  }
 0x11a   :  { %1189 = vsyncadd [#allocation3], 4294967040 }
 0x11b   :  { %1052 = vsyncpa [#allocation3], 1 }

</bundles_post_ra>
